<compile_context>
chip_gen: v5e
topology: v5e:2x2
jax: 0.10.0
libtpu: 0.0.40
codegen_flags: <defaults>
</compile_context>

<pallas_src>
import jax
import jax.numpy as jnp
from jax.experimental import pallas as pl
from jax.experimental.pallas import tpu as pltpu


def _sageemb_fused_kernel(*refs):
    # refs = (a_ref, x_ref, ws0, wn0, b0, ws1, wn1, b1, ..., o_ref)
    a_ref, x_ref = refs[0], refs[1]
    o_ref = refs[-1]
    layer_refs = refs[2:-1]

    G, N = a_ref.shape[0], a_ref.shape[1]

    # Widen the int8 adjacency to bf16 once; reused by the degree matvec and all
    # layers (exact for {0,1}).
    a = a_ref[...].astype(jnp.bfloat16)                          # (G, N, N)

    # In-degree via an MXU ones-matvec (no f32 copy of A, no XLU row-reduce).
    ones_col = jnp.ones((G, N, 1), jnp.bfloat16)
    deg = jnp.einsum("gij,gjo->gio", a, ones_col,
                     preferred_element_type=jnp.float32)         # (G, N, 1)
    inv_deg = 1.0 / jnp.maximum(deg, 1.0)                        # exact mean (DGL parity)

    h = x_ref[...]                                               # (G, N, F0) f32
    for i in range(0, len(layer_refs), 3):                       # static unroll (3 layers)
        ws_ref, wn_ref, b_ref = layer_refs[i], layer_refs[i + 1], layer_refs[i + 2]
        hb = h.astype(jnp.bfloat16)
        # mean aggregation over in-neighbors (isolated nodes -> 0)
        neigh = jnp.einsum("gij,gjf->gif", a, hb,
                           preferred_element_type=jnp.float32) * inv_deg
        z = (jnp.einsum("gnf,fo->gno", hb, ws_ref[...],
                        preferred_element_type=jnp.float32)
             + jnp.einsum("gnf,fo->gno", neigh.astype(jnp.bfloat16), wn_ref[...],
                          preferred_element_type=jnp.float32)
             + b_ref[...])
        h = jnp.maximum(z, 0.0)

    o_ref[...] = h                                               # (G, N, 128) f32, lane-dense


def _graphs_per_step(B, N):
    """Batch G graphs per grid step: amortize step overhead, fill MXU sublanes."""
    target_rows = 256
    g = max(1, min(B, target_rows // max(N, 1)))
    # VMEM governor: double-buffered int8 adjacency block (2 * G * N^2 bytes).
    g = max(1, min(g, (16 * 1024 * 1024) // max(2 * N * N, 1)))
    return min(g, B)


def _vmem_bytes_estimate(G, N, feat_dims):
    """Rough per-step VMEM footprint: double-buffered blocks + live values."""
    est = 2 * G * N * N * 1                    # int8 adjacency block (x2 buffers)
    est += 2 * G * N * feat_dims[0] * 4        # f32 feature block (x2)
    est += 2 * G * N * feat_dims[-1] * 4       # f32 output block (x2)
    for din, dout in zip(feat_dims[:-1], feat_dims[1:]):
        est += 2 * (2 * din * dout * 2 + dout * 4)   # bf16 W_self+W_neigh + f32 bias (x2)
    est += G * N * N * 2                       # widened bf16 adjacency (live)
    est += 3 * G * N * max(feat_dims) * 4      # h / neigh / z f32 live values
    return est


def sageemb_forward(x, adj, params):
    """SAGEEMB forward. x: (B, N, F), adj: (B, N, N) (rows list in-neighbors).

    Returns (embeddings, None) with embeddings of shape (B*N, out_dim), matching
    the PyTorch module's flattened node-embedding output.
    """
    B, N, F0 = x.shape
    n_layers = len(params)
    out_dim = params[-1][0].shape[1]
    fout_pad = ((out_dim + 127) // 128) * 128    # lane-dense final store width

    G = _graphs_per_step(B, N)
    B_pad = ((B + G - 1) // G) * G

    # Binarized adjacency stored as int8 in HBM (halves the O(N^2) fetch); the
    # kernel widens it to bf16 once per step.
    adj_i8 = (adj != 0).astype(jnp.int8)
    x_f32 = x.astype(jnp.float32)
    if B_pad != B:
        adj_i8 = jnp.pad(adj_i8, ((0, B_pad - B), (0, 0), (0, 0)))
        x_f32 = jnp.pad(x_f32, ((0, B_pad - B), (0, 0), (0, 0)))

    inputs = [adj_i8, x_f32]
    in_specs = [
        pl.BlockSpec((G, N, N), lambda b: (b, 0, 0)),
        pl.BlockSpec((G, N, F0), lambda b: (b, 0, 0)),
    ]
    for li, (w_self, w_neigh, bias) in enumerate(params):
        fout = w_self.shape[1]
        ws, wn = w_self, w_neigh
        b2d = bias.reshape(1, fout).astype(jnp.float32)
        if li == n_layers - 1 and fout != fout_pad:   # pad last layer to 128 lanes
            ws = jnp.pad(ws, ((0, 0), (0, fout_pad - fout)))
            wn = jnp.pad(wn, ((0, 0), (0, fout_pad - fout)))
            b2d = jnp.pad(b2d, ((0, 0), (0, fout_pad - fout)))
        ws = ws.astype(jnp.bfloat16)
        wn = wn.astype(jnp.bfloat16)
        inputs += [ws, wn, b2d]
        in_specs += [
            pl.BlockSpec(ws.shape, lambda b: (0, 0)),     # shared across graphs
            pl.BlockSpec(wn.shape, lambda b: (0, 0)),
            pl.BlockSpec(b2d.shape, lambda b: (0, 0)),
        ]

    feat_dims = [F0] + [p[0].shape[1] for p in params[:-1]] + [fout_pad]
    est = _vmem_bytes_estimate(G, N, feat_dims)
    if est > 44 * 1024 * 1024:
        # TODO(synk): row-block tile the (N, N) adjacency for graphs this large
        # (inner aggregation axis, full h resident in a VMEM scratch); the
        # adjacency block is the governor — re-derive for v7x's 64 MiB VMEM.
        raise NotImplementedError("graph too large for the single-pass adjacency path")
    vmem_limit = int(min(48 * 1024 * 1024, max(32 * 1024 * 1024, 2 * est)))

    out = pl.pallas_call(
        _sageemb_fused_kernel,
        out_shape=jax.ShapeDtypeStruct((B_pad, N, fout_pad), jnp.float32),
        grid_spec=pltpu.PrefetchScalarGridSpec(
            num_scalar_prefetch=0,
            grid=(B_pad // G,),
            in_specs=in_specs,
            out_specs=pl.BlockSpec((G, N, fout_pad), lambda b: (b, 0, 0)),
        ),
        compiler_params=pltpu.CompilerParams(
            dimension_semantics=("parallel",),
            vmem_limit_bytes=vmem_limit),
    )(*inputs)

    # TODO(synk): if the consumer can take the padded 128-lane slab directly,
    # drop this slice (it is an extra HBM pass over the output).
    emb = out.reshape(B_pad * N, fout_pad)[: B * N, :out_dim]
    return emb, None


def init_sage_params(key, in_dim, out_dim, hidden_dim=(64, 32)):
    """Deterministic init of the layer stack: in -> hidden[0] -> ... -> out."""
    dims = [in_dim] + list(hidden_dim) + [out_dim]
    params = []
    for i in range(len(dims) - 1):
        k1, k2, key = jax.random.split(key, 3)
        fan_in, fan_out = dims[i], dims[i + 1]
        scale = 1.0 / jnp.sqrt(jnp.float32(fan_in))
        w_self = jax.random.uniform(k1, (fan_in, fan_out), jnp.float32, -scale, scale)
        w_neigh = jax.random.uniform(k2, (fan_in, fan_out), jnp.float32, -scale, scale)
        bias = jnp.zeros((fan_out,), jnp.float32)
        params.append((w_self, w_neigh, bias))
    return params


def _sageemb_reference(x, adj, params):
    """Pure-JAX f32 reference with identical semantics (for tolerance check)."""
    a = (adj != 0).astype(jnp.float32)
    deg = jnp.maximum(jnp.sum(a, axis=-1, keepdims=True), 1.0)
    h = x.astype(jnp.float32)
    for w_self, w_neigh, bias in params:
        neigh = jnp.einsum("gij,gjf->gif", a, h) / deg
        h = jax.nn.relu(h @ w_self + neigh @ w_neigh + bias)
    return h.reshape(-1, params[-1][0].shape[1])


if __name__ == "__main__":
    B, N, IN_DIM, OUT_DIM = 2, 16, 8, 16
    key = jax.random.PRNGKey(0)
    kx, ka, kp = jax.random.split(key, 3)

    # node features (B, N, F)
    x = jax.random.normal(kx, (B, N, IN_DIM), jnp.float32)

    # random directed adjacency; A[b, i, j] = 1 -> j is an in-neighbor of i
    adj = (jax.random.uniform(ka, (B, N, N)) < 0.3).astype(jnp.float32)

    params = init_sage_params(kp, IN_DIM, OUT_DIM, hidden_dim=(64, 32))

    emb, _ = sageemb_forward(x, adj, params)
    emb = jax.block_until_ready(emb)

    ref = _sageemb_reference(x, adj, params)

    assert emb.shape == (B * N, OUT_DIM)
    assert bool(jnp.all(jnp.isfinite(emb)))
    # bf16 MXU operands with f32 accumulation -> tolerance, not exact, comparison
    assert float(jnp.max(jnp.abs(emb - ref))) < 0.1
    print("KERNEL_OK")
</pallas_src>

<mosaic_0001>
module attributes {stable_mosaic.version = 11 : i64} {
  func.func @_sageemb_fused_kernel(%arg0: i32, %arg1: memref<2x16x16xi8, #tpu.memory_space<vmem>>, %arg2: memref<2x16x8xf32, #tpu.memory_space<vmem>>, %arg3: memref<8x64xbf16, #tpu.memory_space<vmem>>, %arg4: memref<8x64xbf16, #tpu.memory_space<vmem>>, %arg5: memref<1x64xf32, #tpu.memory_space<vmem>>, %arg6: memref<64x32xbf16, #tpu.memory_space<vmem>>, %arg7: memref<64x32xbf16, #tpu.memory_space<vmem>>, %arg8: memref<1x32xf32, #tpu.memory_space<vmem>>, %arg9: memref<32x128xbf16, #tpu.memory_space<vmem>>, %arg10: memref<32x128xbf16, #tpu.memory_space<vmem>>, %arg11: memref<1x128xf32, #tpu.memory_space<vmem>>, %arg12: memref<2x16x128xf32, #tpu.memory_space<vmem>>) attributes {dimension_semantics = [#tpu.dimension_semantics<parallel>], iteration_bounds = array<i64: 1>, scalar_prefetch = 0 : i64, scratch_operands = 0 : i64, tpu.core_type = #tpu.core_type<tc>, window_params = [{transform_indices = @transform_0, window_bounds = array<i64: 2, 16, 16>}, {transform_indices = @transform_1, window_bounds = array<i64: 2, 16, 8>}, {pipeline_mode = #tpu.pipeline_mode<synchronous>, transform_indices = @transform_2, window_bounds = array<i64: 8, 64>}, {pipeline_mode = #tpu.pipeline_mode<synchronous>, transform_indices = @transform_3, window_bounds = array<i64: 8, 64>}, {pipeline_mode = #tpu.pipeline_mode<synchronous>, transform_indices = @transform_4, window_bounds = array<i64: 1, 64>}, {pipeline_mode = #tpu.pipeline_mode<synchronous>, transform_indices = @transform_5, window_bounds = array<i64: 64, 32>}, {pipeline_mode = #tpu.pipeline_mode<synchronous>, transform_indices = @transform_6, window_bounds = array<i64: 64, 32>}, {pipeline_mode = #tpu.pipeline_mode<synchronous>, transform_indices = @transform_7, window_bounds = array<i64: 1, 32>}, {pipeline_mode = #tpu.pipeline_mode<synchronous>, transform_indices = @transform_8, window_bounds = array<i64: 32, 128>}, {pipeline_mode = #tpu.pipeline_mode<synchronous>, transform_indices = @transform_9, window_bounds = array<i64: 32, 128>}, {pipeline_mode = #tpu.pipeline_mode<synchronous>, transform_indices = @transform_10, window_bounds = array<i64: 1, 128>}, {transform_indices = @transform_11, window_bounds = array<i64: 2, 16, 128>}]} {
    %c0 = arith.constant 0 : index
    %c0_0 = arith.constant 0 : index
    %c0_1 = arith.constant 0 : index
    %0 = vector.load %arg1[%c0, %c0_0, %c0_1] : memref<2x16x16xi8, #tpu.memory_space<vmem>>, vector<2x16x16xi8>
    %1 = arith.sitofp %0 : vector<2x16x16xi8> to vector<2x16x16xbf16>
    %cst = arith.constant 1.000000e+00 : bf16
    %2 = vector.broadcast %cst : bf16 to vector<2x16x1xbf16>
    "tpu.trace_start"() <{level = 10 : i32, message = "gij,gjo->gio"}> : () -> ()
    %cst_2 = arith.constant dense<0.000000e+00> : vector<2x16x1xf32>
    %3 = tpu.matmul %1, %2, %cst_2 {dimension_numbers = #tpu.dot_dimension_numbers<[2], [1], [1], [2], [0, 0, 0, 1, 1, 2], [0], [0]>} : vector<2x16x16xbf16>, vector<2x16x1xbf16>, vector<2x16x1xf32> -> vector<2x16x1xf32>
    "tpu.trace_stop"() : () -> ()
    %cst_3 = arith.constant 1.000000e+00 : f32
    %4 = vector.broadcast %cst_3 : f32 to vector<2x16x1xf32>
    %5 = arith.maximumf %3, %4 : vector<2x16x1xf32>
    %cst_4 = arith.constant 1.000000e+00 : f32
    %6 = vector.broadcast %cst_4 : f32 to vector<2x16x1xf32>
    %7 = arith.divf %6, %5 : vector<2x16x1xf32>
    %c0_5 = arith.constant 0 : index
    %c0_6 = arith.constant 0 : index
    %c0_7 = arith.constant 0 : index
    %8 = vector.load %arg2[%c0_5, %c0_6, %c0_7] : memref<2x16x8xf32, #tpu.memory_space<vmem>>, vector<2x16x8xf32>
    %9 = arith.truncf %8 : vector<2x16x8xf32> to vector<2x16x8xbf16>
    "tpu.trace_start"() <{level = 10 : i32, message = "gij,gjf->gif"}> : () -> ()
    %cst_8 = arith.constant dense<0.000000e+00> : vector<2x16x8xf32>
    %10 = tpu.matmul %1, %9, %cst_8 {dimension_numbers = #tpu.dot_dimension_numbers<[2], [1], [1], [2], [0, 0, 0, 1, 1, 2], [0], [0]>} : vector<2x16x16xbf16>, vector<2x16x8xbf16>, vector<2x16x8xf32> -> vector<2x16x8xf32>
    "tpu.trace_stop"() : () -> ()
    %11 = vector.broadcast %7 : vector<2x16x1xf32> to vector<2x16x8xf32>
    %12 = arith.mulf %10, %11 : vector<2x16x8xf32>
    %c0_9 = arith.constant 0 : index
    %c0_10 = arith.constant 0 : index
    %13 = vector.load %arg3[%c0_9, %c0_10] : memref<8x64xbf16, #tpu.memory_space<vmem>>, vector<8x64xbf16>
    "tpu.trace_start"() <{level = 10 : i32, message = "gnf,fo->gno"}> : () -> ()
    %cst_11 = arith.constant dense<0.000000e+00> : vector<2x16x64xf32>
    %14 = tpu.matmul %9, %13, %cst_11 {dimension_numbers = #tpu.dot_dimension_numbers<[2], [0], [0, 1], [1], [0, 0, 0, 1, 1, 1], [], []>} : vector<2x16x8xbf16>, vector<8x64xbf16>, vector<2x16x64xf32> -> vector<2x16x64xf32>
    "tpu.trace_stop"() : () -> ()
    %15 = arith.truncf %12 : vector<2x16x8xf32> to vector<2x16x8xbf16>
    %c0_12 = arith.constant 0 : index
    %c0_13 = arith.constant 0 : index
    %16 = vector.load %arg4[%c0_12, %c0_13] : memref<8x64xbf16, #tpu.memory_space<vmem>>, vector<8x64xbf16>
    "tpu.trace_start"() <{level = 10 : i32, message = "gnf,fo->gno"}> : () -> ()
    %cst_14 = arith.constant dense<0.000000e+00> : vector<2x16x64xf32>
    %17 = tpu.matmul %15, %16, %cst_14 {dimension_numbers = #tpu.dot_dimension_numbers<[2], [0], [0, 1], [1], [0, 0, 0, 1, 1, 1], [], []>} : vector<2x16x8xbf16>, vector<8x64xbf16>, vector<2x16x64xf32> -> vector<2x16x64xf32>
    "tpu.trace_stop"() : () -> ()
    %18 = arith.addf %14, %17 : vector<2x16x64xf32>
    %c0_15 = arith.constant 0 : index
    %c0_16 = arith.constant 0 : index
    %19 = vector.load %arg5[%c0_15, %c0_16] : memref<1x64xf32, #tpu.memory_space<vmem>>, vector<1x64xf32>
    %20 = vector.shape_cast %19 : vector<1x64xf32> to vector<1x1x64xf32>
    %21 = vector.broadcast %20 : vector<1x1x64xf32> to vector<2x16x64xf32>
    %22 = arith.addf %18, %21 : vector<2x16x64xf32>
    %cst_17 = arith.constant 0.000000e+00 : f32
    %23 = vector.broadcast %cst_17 : f32 to vector<2x16x64xf32>
    %24 = arith.maximumf %22, %23 : vector<2x16x64xf32>
    %25 = arith.truncf %24 : vector<2x16x64xf32> to vector<2x16x64xbf16>
    "tpu.trace_start"() <{level = 10 : i32, message = "gij,gjf->gif"}> : () -> ()
    %cst_18 = arith.constant dense<0.000000e+00> : vector<2x16x64xf32>
    %26 = tpu.matmul %1, %25, %cst_18 {dimension_numbers = #tpu.dot_dimension_numbers<[2], [1], [1], [2], [0, 0, 0, 1, 1, 2], [0], [0]>} : vector<2x16x16xbf16>, vector<2x16x64xbf16>, vector<2x16x64xf32> -> vector<2x16x64xf32>
    "tpu.trace_stop"() : () -> ()
    %27 = vector.broadcast %7 : vector<2x16x1xf32> to vector<2x16x64xf32>
    %28 = arith.mulf %26, %27 : vector<2x16x64xf32>
    %c0_19 = arith.constant 0 : index
    %c0_20 = arith.constant 0 : index
    %29 = vector.load %arg6[%c0_19, %c0_20] : memref<64x32xbf16, #tpu.memory_space<vmem>>, vector<64x32xbf16>
    "tpu.trace_start"() <{level = 10 : i32, message = "gnf,fo->gno"}> : () -> ()
    %cst_21 = arith.constant dense<0.000000e+00> : vector<2x16x32xf32>
    %30 = tpu.matmul %25, %29, %cst_21 {dimension_numbers = #tpu.dot_dimension_numbers<[2], [0], [0, 1], [1], [0, 0, 0, 1, 1, 1], [], []>} : vector<2x16x64xbf16>, vector<64x32xbf16>, vector<2x16x32xf32> -> vector<2x16x32xf32>
    "tpu.trace_stop"() : () -> ()
    %31 = arith.truncf %28 : vector<2x16x64xf32> to vector<2x16x64xbf16>
    %c0_22 = arith.constant 0 : index
    %c0_23 = arith.constant 0 : index
    %32 = vector.load %arg7[%c0_22, %c0_23] : memref<64x32xbf16, #tpu.memory_space<vmem>>, vector<64x32xbf16>
    "tpu.trace_start"() <{level = 10 : i32, message = "gnf,fo->gno"}> : () -> ()
    %cst_24 = arith.constant dense<0.000000e+00> : vector<2x16x32xf32>
    %33 = tpu.matmul %31, %32, %cst_24 {dimension_numbers = #tpu.dot_dimension_numbers<[2], [0], [0, 1], [1], [0, 0, 0, 1, 1, 1], [], []>} : vector<2x16x64xbf16>, vector<64x32xbf16>, vector<2x16x32xf32> -> vector<2x16x32xf32>
    "tpu.trace_stop"() : () -> ()
    %34 = arith.addf %30, %33 : vector<2x16x32xf32>
    %c0_25 = arith.constant 0 : index
    %c0_26 = arith.constant 0 : index
    %35 = vector.load %arg8[%c0_25, %c0_26] : memref<1x32xf32, #tpu.memory_space<vmem>>, vector<1x32xf32>
    %36 = vector.shape_cast %35 : vector<1x32xf32> to vector<1x1x32xf32>
    %37 = vector.broadcast %36 : vector<1x1x32xf32> to vector<2x16x32xf32>
    %38 = arith.addf %34, %37 : vector<2x16x32xf32>
    %cst_27 = arith.constant 0.000000e+00 : f32
    %39 = vector.broadcast %cst_27 : f32 to vector<2x16x32xf32>
    %40 = arith.maximumf %38, %39 : vector<2x16x32xf32>
    %41 = arith.truncf %40 : vector<2x16x32xf32> to vector<2x16x32xbf16>
    "tpu.trace_start"() <{level = 10 : i32, message = "gij,gjf->gif"}> : () -> ()
    %cst_28 = arith.constant dense<0.000000e+00> : vector<2x16x32xf32>
    %42 = tpu.matmul %1, %41, %cst_28 {dimension_numbers = #tpu.dot_dimension_numbers<[2], [1], [1], [2], [0, 0, 0, 1, 1, 2], [0], [0]>} : vector<2x16x16xbf16>, vector<2x16x32xbf16>, vector<2x16x32xf32> -> vector<2x16x32xf32>
    "tpu.trace_stop"() : () -> ()
    %43 = vector.broadcast %7 : vector<2x16x1xf32> to vector<2x16x32xf32>
    %44 = arith.mulf %42, %43 : vector<2x16x32xf32>
    %c0_29 = arith.constant 0 : index
    %c0_30 = arith.constant 0 : index
    %45 = vector.load %arg9[%c0_29, %c0_30] : memref<32x128xbf16, #tpu.memory_space<vmem>>, vector<32x128xbf16>
    "tpu.trace_start"() <{level = 10 : i32, message = "gnf,fo->gno"}> : () -> ()
    %cst_31 = arith.constant dense<0.000000e+00> : vector<2x16x128xf32>
    %46 = tpu.matmul %41, %45, %cst_31 {dimension_numbers = #tpu.dot_dimension_numbers<[2], [0], [0, 1], [1], [0, 0, 0, 1, 1, 1], [], []>} : vector<2x16x32xbf16>, vector<32x128xbf16>, vector<2x16x128xf32> -> vector<2x16x128xf32>
    "tpu.trace_stop"() : () -> ()
    %47 = arith.truncf %44 : vector<2x16x32xf32> to vector<2x16x32xbf16>
    %c0_32 = arith.constant 0 : index
    %c0_33 = arith.constant 0 : index
    %48 = vector.load %arg10[%c0_32, %c0_33] : memref<32x128xbf16, #tpu.memory_space<vmem>>, vector<32x128xbf16>
    "tpu.trace_start"() <{level = 10 : i32, message = "gnf,fo->gno"}> : () -> ()
    %cst_34 = arith.constant dense<0.000000e+00> : vector<2x16x128xf32>
    %49 = tpu.matmul %47, %48, %cst_34 {dimension_numbers = #tpu.dot_dimension_numbers<[2], [0], [0, 1], [1], [0, 0, 0, 1, 1, 1], [], []>} : vector<2x16x32xbf16>, vector<32x128xbf16>, vector<2x16x128xf32> -> vector<2x16x128xf32>
    "tpu.trace_stop"() : () -> ()
    %50 = arith.addf %46, %49 : vector<2x16x128xf32>
    %c0_35 = arith.constant 0 : index
    %c0_36 = arith.constant 0 : index
    %51 = vector.load %arg11[%c0_35, %c0_36] : memref<1x128xf32, #tpu.memory_space<vmem>>, vector<1x128xf32>
    %52 = vector.shape_cast %51 : vector<1x128xf32> to vector<1x1x128xf32>
    %53 = vector.broadcast %52 : vector<1x1x128xf32> to vector<2x16x128xf32>
    %54 = arith.addf %50, %53 : vector<2x16x128xf32>
    %cst_37 = arith.constant 0.000000e+00 : f32
    %55 = vector.broadcast %cst_37 : f32 to vector<2x16x128xf32>
    %56 = arith.maximumf %54, %55 : vector<2x16x128xf32>
    %c0_38 = arith.constant 0 : index
    %c0_39 = arith.constant 0 : index
    %c0_40 = arith.constant 0 : index
    %57 = vector.load %arg12[%c0_38, %c0_39, %c0_40] : memref<2x16x128xf32, #tpu.memory_space<vmem>>, vector<2x16x128xf32>
    tpu.vector_store %arg12[%c0_38, %c0_39, %c0_40], %56 {strides = array<i32>} : memref<2x16x128xf32, #tpu.memory_space<vmem>>, vector<2x16x128xf32>,
    return
  }
  func.func @transform_0(%arg0: i32) -> (i32, i32, i32) {
    %c0_i32 = arith.constant 0 : i32
    %c0_i32_0 = arith.constant 0 : i32
    %c0_i32_1 = arith.constant 0 : i32
    return %arg0, %c0_i32, %c0_i32_0 : i32, i32, i32
  }
  func.func @transform_1(%arg0: i32) -> (i32, i32, i32) {
    %c0_i32 = arith.constant 0 : i32
    %c0_i32_0 = arith.constant 0 : i32
    %c0_i32_1 = arith.constant 0 : i32
    return %arg0, %c0_i32, %c0_i32_0 : i32, i32, i32
  }
  func.func @transform_2(%arg0: i32) -> (i32, i32) {
    %c0_i32 = arith.constant 0 : i32
    %c0_i32_0 = arith.constant 0 : i32
    %c0_i32_1 = arith.constant 0 : i32
    return %c0_i32, %c0_i32_0 : i32, i32
  }
  func.func @transform_3(%arg0: i32) -> (i32, i32) {
    %c0_i32 = arith.constant 0 : i32
    %c0_i32_0 = arith.constant 0 : i32
    %c0_i32_1 = arith.constant 0 : i32
    return %c0_i32, %c0_i32_0 : i32, i32
  }
  func.func @transform_4(%arg0: i32) -> (i32, i32) {
    %c0_i32 = arith.constant 0 : i32
    %c0_i32_0 = arith.constant 0 : i32
    %c0_i32_1 = arith.constant 0 : i32
    return %c0_i32, %c0_i32_0 : i32, i32
  }
  func.func @transform_5(%arg0: i32) -> (i32, i32) {
    %c0_i32 = arith.constant 0 : i32
    %c0_i32_0 = arith.constant 0 : i32
    %c0_i32_1 = arith.constant 0 : i32
    return %c0_i32, %c0_i32_0 : i32, i32
  }
  func.func @transform_6(%arg0: i32) -> (i32, i32) {
    %c0_i32 = arith.constant 0 : i32
    %c0_i32_0 = arith.constant 0 : i32
    %c0_i32_1 = arith.constant 0 : i32
    return %c0_i32, %c0_i32_0 : i32, i32
  }
  func.func @transform_7(%arg0: i32) -> (i32, i32) {
    %c0_i32 = arith.constant 0 : i32
    %c0_i32_0 = arith.constant 0 : i32
    %c0_i32_1 = arith.constant 0 : i32
    return %c0_i32, %c0_i32_0 : i32, i32
  }
  func.func @transform_8(%arg0: i32) -> (i32, i32) {
    %c0_i32 = arith.constant 0 : i32
    %c0_i32_0 = arith.constant 0 : i32
    %c0_i32_1 = arith.constant 0 : i32
    return %c0_i32, %c0_i32_0 : i32, i32
  }
  func.func @transform_9(%arg0: i32) -> (i32, i32) {
    %c0_i32 = arith.constant 0 : i32
    %c0_i32_0 = arith.constant 0 : i32
    %c0_i32_1 = arith.constant 0 : i32
    return %c0_i32, %c0_i32_0 : i32, i32
  }
  func.func @transform_10(%arg0: i32) -> (i32, i32) {
    %c0_i32 = arith.constant 0 : i32
    %c0_i32_0 = arith.constant 0 : i32
    %c0_i32_1 = arith.constant 0 : i32
    return %c0_i32, %c0_i32_0 : i32, i32
  }
  func.func @transform_11(%arg0: i32) -> (i32, i32, i32) {
    %c0_i32 = arith.constant 0 : i32
    %c0_i32_0 = arith.constant 0 : i32
    %c0_i32_1 = arith.constant 0 : i32
    return %arg0, %c0_i32, %c0_i32_0 : i32, i32, i32
  }
}

</mosaic_0001>

<bundles_post_ra>
// kernel: tpu_custom_call.1
= control target key start
LH: loop header
LB: loop body
LE: loop exit
PB: predicated region body
PF: predicated region fallthrough
CT: control target
= control target key end

     0   :  { %v825_v3 = vmov 1065369472   ;;  %s1025_s0 = inlined_call_operand.vmem [shape: s8[2,16,16], index: 0, kind: input, shape index: {}]   ;;  %s1026_s1 = inlined_call_operand.vmem [shape: f32[2,16,8], index: 1, kind: input, shape index: {}]   ;;  %s1027_s2 = inlined_call_operand.vmem [shape: bf16[8,64], index: 2, kind: input, shape index: {}]   ;;  %s1028_s3 = inlined_call_operand.vmem [shape: bf16[8,64], index: 3, kind: input, shape index: {}]   ;;  %s1029_s4 = inlined_call_operand.vmem [shape: f32[1,64], index: 4, kind: input, shape index: {}]   ;;  %s1030_s5 = inlined_call_operand.vmem [shape: bf16[64,32], index: 5, kind: input, shape index: {}]   ;;  %s1031_s6 = inlined_call_operand.vmem [shape: bf16[64,32], index: 6, kind: input, shape index: {}]   ;;  %s1032_s7 = inlined_call_operand.vmem [shape: f32[1,32], index: 7, kind: input, shape index: {}]   ;;  %s1033_s8 = inlined_call_operand.vmem [shape: bf16[32,128], index: 8, kind: input, shape index: {}]   ;;  %s1034_s9 = inlined_call_operand.vmem [shape: bf16[32,128], index: 9, kind: input, shape index: {}]   ;;  %s1035_s10 = inlined_call_operand.vmem [shape: f32[1,128], index: 10, kind: input, shape index: {}]   ;;  %s1036_s11 = inlined_call_operand.hbm [shape: f32[2,16,128], index: 11, kind: output, shape index: {}]  }
   0x1   :  { %v773_v0 = vld [vmem:[%s1025_s0] sm:$0xff]   ;;  %v167_v2 = vld [vmem:[%s1026_s1 + $0x8] sm:$0xff]  ;;  %73 = vmatpush.bf16.msra.mxu2 %v825_v3  ;;  %95 = vmatpush.bf16.msra.mxu3 %v825_v3 }
   0x2   :  { %v166_v1 = vld [vmem:[%s1026_s1] sm:$0xff]  ;;  %v774_v4 = vunpack.c.0.s8 %v773_v0  ;;  %v775_v5 = vunpack.c.1.s8 %v773_v0  ;;  %v778_v6 = vunpack.c.2.s8 %v773_v0  ;;  %v779_v7 = vunpack.c.3.s8 %v773_v0 }
   0x3   :  { %v170_v8 = vpack.c.bf16 %v166_v1, %v166_v1  ;;  %v171_v9 = vpack.c.bf16 %v167_v2, %v167_v2 }
   0x4   :  { %16 = vsyncpa [#allocation3], 0  ;;  %v49_v10 = vcvt.s32.f32 %v774_v4  ;;  %v50_v11 = vcvt.s32.f32 %v775_v5  ;;  %v51_v12 = vcvt.s32.f32 %v778_v6  ;;  %v52_v13 = vcvt.s32.f32 %v779_v7  ;;  %v168_v27 = vld [vmem:[%s1026_s1 + $0x10] sm:$0xff]  ;;  %v169_v28 = vld [vmem:[%s1026_s1 + $0x18] sm:$0xff]  ;;  %s680_s30 = sshll.u32 %s1036_s11, 4  ;;  %s828_s12 = smov 128   ;;  %s681_s30 = int_to_ptr.hbm [resolvable:$true] %s680_s30 }
   0x5   :  { %v176_v14 = vunpack.c.l.b16 %v170_v8  ;;  %v177_v15 = vunpack.c.l.b16 %v171_v9  ;;  %vm62_vm0 = vcmask 130048   ;;  %v172_v29 = vpack.c.bf16 %v168_v27, %v168_v27  ;;  %s829_s13 = smov 8  }
   0x6   :  { %v53_v16 = vpack.c.bf16 %v49_v10, %v49_v10  ;;  %v54_v17 = vpack.c.bf16 %v50_v11, %v50_v11  ;;  %v55_v18 = vpack.c.bf16 %v51_v12, %v51_v12  ;;  %v56_v19 = vpack.c.bf16 %v52_v13, %v52_v13 }
   0x7   :  { %v899_v20 = vpack.c.b16 %v177_v15, %v176_v14  ;;  %v173_v30 = vpack.c.bf16 %v169_v28, %v169_v28  ;;  %v196_v31 = vunpack.c.l.b16 %v172_v29  ;;  %v826_v34 = vmov 0  }
   0x8   :  { %v59_v21 = vunpack.c.l.b16 %v53_v16  ;;  %v60_v22 = vunpack.c.l.b16 %v54_v17  ;;  %v82_v23 = vunpack.c.l.b16 %v55_v18  ;;  %v83_v24 = vunpack.c.l.b16 %v56_v19  ;;  %787 = vset.pattern.permute.xlu1 %v826_v34  ;;  %786 = vset.pattern.permute.xlu0 %v826_v34 }
   0x9   :  { %187 = vmatpush.bf16.msrb.mxu2 %v899_v20  ;;  %v197_v32 = vunpack.c.l.b16 %v173_v30 }
   0xa   :  { %v902_v25 = vpack.c.b16 %v60_v22, %v59_v21  ;;  %v904_v26 = vpack.c.b16 %v83_v24, %v82_v23  ;;  %v238_v21 = vld [vmem:[%s1027_s2] sm:$0xf] }
   0xb   :  { %v918_v33 = vpack.c.b16 %v197_v32, %v196_v31  ;;  %v243_v23 = vld [vmem:[%s1028_s3] sm:$0xf] }
   0xc   :  { %692 = vmatmul.msk.bf16.vlgmr.msra.gmra.mxu2 %vm62_vm0, %v902_v25  ;;  %693 = vmatmul.msk.bf16.vlgmr.msra.gmra.mxu3 %vm62_vm0, %v904_v26 }
   0xd   :  { %207 = vmatpush.bf16.msrb.mxu3 %v918_v33 }
  0x1c   :  { %694 = vmatmul.msk.bf16.vlgmr.msrb.gmra.mxu2 %vm62_vm0, %v902_v25  ;;  %695 = vmatmul.msk.bf16.vlgmr.msrb.gmra.mxu3 %vm62_vm0, %v904_v26 }
  0x8f   :  { %v75_v35 = vpop.f32.mrf.mxu2  ;;  %v97_v36 = vpop.f32.mrf.mxu3 }
  0x90   :  { %v102_v37 = vmax.f32 %v75_v35, 1.0  ;;  %v104_v38 = vmax.f32 %v97_v36, 1.0 }
  0x92   :  { %791 = vrcp.f32 %v102_v37  ;;  %vm141_vm1 = vweird.f32 %v104_v38  ;;  %v147_v47 = vand.u32 2147483648, %v104_v38  ;;  %v145_v50 = vand.u32 2147483647, %v104_v38 }
  0x93   :  { %793 = vrcp.f32 %v104_v38  ;;  %v117_v51 = vand.u32 2147483648, %v102_v37  ;;  %v115_v53 = vand.u32 2147483647, %v102_v37  ;;  %vm111_vm5 = vweird.f32 %v102_v37 }
  0x94   :  { %v148_v56 = vor.u32 1.1754944e-38, %v147_v47  ;;  %vm146_vm6 = vcmp.eq.f32.partialorder %v145_v50, 8.507059e+37 }
  0x95   :  { %v118_v60 = vor.u32 1.1754944e-38, %v117_v51  ;;  %vm116_vm8 = vcmp.eq.f32.partialorder %v115_v53, 8.507059e+37  ;;  %v788_v51 = vld [vmem:[%s1029_s4] ss:$0 sm:$0xff] }
  0x97   :  { %v77_v39 = vpop.f32.mrf.mxu2  ;;  %v99_v40 = vpop.f32.mrf.mxu3 }
  0x98   :  { %v792_v41 = vpop.eup %791  ;;  %v103_v42 = vmax.f32 %v77_v39, 1.0  ;;  %v105_v43 = vmax.f32 %v99_v40, 1.0 }
  0x99   :  { %v794_v44 = vpop.eup %793  ;;  %v107_v45 = vmul.f32 %v792_v41, %v102_v37  ;;  %vm112_vm3 = vweird.f32 %v792_v41 }
  0x9a   :  { %795 = vrcp.f32 %v103_v42  ;;  %v137_v46 = vmul.f32 %v794_v44, %v104_v38  ;;  %vm142_vm2 = vweird.f32 %v794_v44  ;;  %vm113_vm7 = vmor %vm111_vm5, %vm112_vm3  ;;  %v132_v6 = vand.u32 2147483648, %v103_v42 }
  0x9b   :  { %797 = vrcp.f32 %v105_v43  ;;  %v108_v48 = vsub.f32 1.0, %v107_v45  ;;  %vm923_vm4 = vmor %vm141_vm1, %vm142_vm2  ;;  %v162_v7 = vand.u32 2147483648, %v105_v43  ;;  %v130_v9 = vand.u32 2147483647, %v103_v42 }
  0x9c   :  { %v138_v49 = vsub.f32 1.0, %v137_v46  ;;  %vm156_vm10 = vweird.f32 %v105_v43  ;;  %v160_v11 = vand.u32 2147483647, %v105_v43  ;;  %vm126_vm12 = vweird.f32 %v103_v42 }
  0x9d   :  { %v109_v52 = vmul.f32 %v792_v41, %v108_v48  ;;  %v133_v14 = vor.u32 1.1754944e-38, %v132_v6  ;;  %v163_v15 = vor.u32 1.1754944e-38, %v162_v7  ;;  %vm131_vm15 = vcmp.eq.f32.partialorder %v130_v9, 8.507059e+37 }
  0x9e   :  { %v139_v54 = vmul.f32 %v794_v44, %v138_v49  ;;  %vm161_vm1 = vcmp.eq.f32.partialorder %v160_v11, 8.507059e+37  ;;  %vm261_vm2 = vcmask 1043456   ;;  %vm254_vm3 = vcmask 64512  }
  0x9f   :  { %v110_v57 = vadd.f32 %v792_v41, %v109_v52  ;;  %v291_v22 = vsel %vm261_vm2, %v238_v21, 0  ;;  %v263_v24 = vsel %vm261_vm2, %v243_v23, 0  ;;  %v189_v27 = vpop.f32.mrf.mxu2  ;;  %v209_v31 = vpop.f32.mrf.mxu3  ;;  %v766_v21 = vld [vmem:[%s1031_s6 + $0x10] sm:$0xff]  ;;  %v764_v23 = vld [vmem:[%s1031_s6] sm:$0xff]  ;;  %vm595_vm5 = vcmask 261120  }
  0xa0   :  { %v796_v58 = vpop.eup %795  ;;  %v140_v59 = vadd.f32 %v794_v44, %v139_v54  ;;  %300 = vmatpush.bf16.msra.mxu1 %v291_v22  ;;  %272 = vmatpush.bf16.msra.mxu0 %v263_v24  ;;  %v765_v22 = vld [vmem:[%s1031_s6 + $0x8] sm:$0xff] }
  0xa1   :  { %v798_v61 = vpop.eup %797  ;;  %v114_v62 = vsel %vm113_vm7, %v792_v41, %v110_v57  ;;  %v122_v63 = vmul.f32 %v796_v58, %v103_v42  ;;  %vm127_vm9 = vweird.f32 %v796_v58 }
  0xa2   :  { %v144_v0 = vsel %vm923_vm4, %v794_v44, %v140_v59  ;;  %v119_v1 = vsel %vm116_vm8, %v118_v60, %v114_v62  ;;  %v152_v2 = vmul.f32 %v798_v61, %v105_v43  ;;  %vm157_vm11 = vweird.f32 %v798_v61  ;;  %vm128_vm13 = vmor %vm126_vm12, %vm127_vm9 }
  0xa3   :  { %v149_v3 = vsel %vm146_vm6, %v148_v56, %v144_v0  ;;  %216 = vperm.xlu0 %786, %v119_v1   ;;  %v123_v4 = vsub.f32 1.0, %v122_v63  ;;  %vm158_vm14 = vmor %vm156_vm10, %vm157_vm11  ;;  %698 = vmatmul.msk.bf16.vlgmr.msra.gmra.mxu1 %vm254_vm3, %v899_v20  ;;  %vm426_vm4 = vcmask 523264  }
  0xa4   :  { %226 = vperm.xlu1 %787, %v149_v3   ;;  %v153_v5 = vsub.f32 1.0, %v152_v2 }
  0xa5   :  { %v124_v8 = vmul.f32 %v796_v58, %v123_v4 }
  0xa6   :  { %v154_v10 = vmul.f32 %v798_v61, %v153_v5 }
  0xa7   :  { %v125_v12 = vadd.f32 %v796_v58, %v124_v8  ;;  %v191_v32 = vpop.f32.mrf.mxu2  ;;  %v211_v40 = vpop.f32.mrf.mxu3 }
  0xa8   :  { %v155_v13 = vadd.f32 %v798_v61, %v154_v10 }
  0xa9   :  { %v129_v16 = vsel %vm128_vm13, %v796_v58, %v125_v12 }
  0xaa   :  { %v159_v17 = vsel %vm158_vm14, %v798_v61, %v155_v13  ;;  %v134_v18 = vsel %vm131_vm15, %v133_v14, %v129_v16  ;;  %v763_v14 = vld [vmem:[%s1030_s5 + $0x18] sm:$0xff]  ;;  %v762_v16 = vld [vmem:[%s1030_s5 + $0x10] sm:$0xff] }
  0xab   :  { %v164_v19 = vsel %vm161_vm1, %v163_v15, %v159_v17  ;;  %221 = vperm.xlu0 %786, %v134_v18   ;;  %v761_v17 = vld [vmem:[%s1030_s5 + $0x8] sm:$0xff]  ;;  %v760_v18 = vld [vmem:[%s1030_s5] sm:$0xff] }
  0xac   :  { %231 = vperm.xlu1 %787, %v164_v19   ;;  %v767_v19 = vld [vmem:[%s1031_s6 + $0x18] sm:$0xff] }
  0xb3   :  { %699 = vmatmul.msk.bf16.gmra.mxu1 %vm254_vm3, %v918_v33 }
 0x115   :  { %v939_v28 = vpop.permute.xlu0 %216 }
 0x116   :  { %v234_v29 = vmul.f32 %v939_v28, %v189_v27  ;;  %v942_v30 = vpop.permute.xlu1 %226 }
 0x117   :  { %v236_v42 = vmul.f32 %v942_v30, %v209_v31 }
 0x118   :  { %v239_v20 = vpack.c.bf16 %v234_v29, %v234_v29 }
 0x119   :  { %v241_v44 = vpack.c.bf16 %v236_v42, %v236_v42 }
 0x11a   :  { %v248_v37 = vunpack.c.l.b16 %v239_v20 }
 0x11b   :  { %v250_v46 = vunpack.c.l.b16 %v241_v44 }
 0x11d   :  { %v944_v34 = vpop.permute.xlu0 %221 }
 0x11e   :  { %v235_v35 = vmul.f32 %v944_v34, %v191_v32  ;;  %v947_v33 = vpop.permute.xlu1 %231 }
 0x11f   :  { %v237_v41 = vmul.f32 %v947_v33, %v211_v40 }
 0x120   :  { %v240_v36 = vpack.c.bf16 %v235_v35, %v235_v35  ;;  %v302_v48 = vpop.f32.mrf.mxu1 }
 0x121   :  { %v242_v43 = vpack.c.bf16 %v237_v41, %v237_v41 }
 0x122   :  { %v249_v38 = vunpack.c.l.b16 %v240_v36 }
 0x123   :  { %v251_v45 = vunpack.c.l.b16 %v242_v43 }
 0x124   :  { %v252_v39 = vpack.c.b16 %v249_v38, %v248_v37 }
 0x125   :  { %v253_v47 = vpack.c.b16 %v251_v45, %v250_v46 }
 0x126   :  { %696 = vmatmul.msk.bf16.vlgmr.msra.gmra.mxu0 %vm254_vm3, %v252_v39 }
 0x128   :  { %v304_v52 = vpop.f32.mrf.mxu1 }
 0x130   :  { %v307_v60 = vpop.f32.mrf.mxu1 }
 0x136   :  { %697 = vmatmul.msk.bf16.gmra.mxu0 %vm254_vm3, %v253_v47 }
 0x138   :  { %v309_v4 = vpop.f32.mrf.mxu1 }
 0x1a3   :  { %v274_v49 = vpop.f32.mrf.mxu0 }
 0x1a4   :  { %v303_v50 = vadd.f32 %v302_v48, %v274_v49 }
 0x1a6   :  { %v316_v53 = vadd.f32 %v788_v51, %v303_v50  ;;  %v789_v50 = vld [vmem:[%s1032_s7] ss:$0 sm:$0xff] }
 0x1a8   :  { %v320_v55 = vmax.f32 %v316_v53, 0.0 }
 0x1aa   :  { %v324_v58 = vpack.c.bf16 %v320_v55, %v320_v55 }
 0x1ab   :  { %v276_v54 = vpop.f32.mrf.mxu0 }
 0x1ac   :  { %v305_v56 = vadd.f32 %v304_v52, %v276_v54  ;;  %v330_v63 = vunpack.c.l.b16 %v324_v58 }
 0x1ae   :  { %v317_v57 = vadd.f32 %v788_v51, %v305_v56 }
 0x1b0   :  { %v321_v59 = vmax.f32 %v317_v57, 0.0 }
 0x1b2   :  { %v325_v61 = vpack.c.bf16 %v321_v59, %v321_v59 }
 0x1b3   :  { %v279_v62 = vpop.f32.mrf.mxu0 }
 0x1b4   :  { %v331_v0 = vunpack.c.l.b16 %v325_v61  ;;  %v308_v1 = vadd.f32 %v307_v60, %v279_v62 }
 0x1b6   :  { %v332_v2 = vpack.c.b16 %v331_v0, %v330_v63  ;;  %v318_v3 = vadd.f32 %v788_v51, %v308_v1 }
 0x1b8   :  { %341 = vmatpush.bf16.msra.mxu2 %v332_v2  ;;  %v322_v6 = vmax.f32 %v318_v3, 0.0 }
 0x1ba   :  { %v326_v9 = vpack.c.bf16 %v322_v6, %v322_v6 }
 0x1bb   :  { %v281_v5 = vpop.f32.mrf.mxu0  ;;  %700 = vmatmul.msk.bf16.vlgmr.msra.gmra.mxu2 %vm62_vm0, %v902_v25 }
 0x1bc   :  { %v310_v7 = vadd.f32 %v309_v4, %v281_v5  ;;  %v350_v12 = vunpack.c.l.b16 %v326_v9  ;;  %437 = vmatpush.bf16.msrb.mxu2 %v767_v19 }
 0x1be   :  { %v319_v8 = vadd.f32 %v788_v51, %v310_v7 }
 0x1c0   :  { %v323_v10 = vmax.f32 %v319_v8, 0.0  ;;  %438 = vmatpush.bf16.msrb.mxu2 %v766_v21 }
 0x1c2   :  { %v327_v11 = vpack.c.bf16 %v323_v10, %v323_v10 }
 0x1c4   :  { %v351_v13 = vunpack.c.l.b16 %v327_v11  ;;  %439 = vmatpush.bf16.msrb.mxu2 %v765_v22 }
 0x1c6   :  { %v352_v15 = vpack.c.b16 %v351_v13, %v350_v12  ;;  %v769_v13 = vld [vmem:[%s1033_s8 + $0x8] sm:$0xff] }
 0x1c8   :  { %361 = vmatpush.bf16.msra.mxu3 %v352_v15  ;;  %440 = vmatpush.bf16.msrb.mxu2 %v764_v23 }
 0x1cb   :  { %701 = vmatmul.msk.bf16.vlgmr.msra.gmra.mxu3 %vm62_vm0, %v904_v26 }
 0x1cc   :  { %486 = vmatpush.bf16.msrb.mxu3 %v763_v14 }
 0x1d0   :  { %487 = vmatpush.bf16.msrb.mxu3 %v762_v16  ;;  %v770_v16 = vld [vmem:[%s1034_s9] sm:$0xff] }
 0x1d4   :  { %488 = vmatpush.bf16.msrb.mxu3 %v761_v17 }
 0x1d8   :  { %489 = vmatpush.bf16.msrb.mxu3 %v760_v18 }
 0x1db   :  { %736 = vmatmul.msk.bf16.vlgmr.msrb.gmra.mxu3 %vm426_vm4, %v332_v2 }
 0x1eb   :  { %737 = vmatmul.msk.bf16.gmra.mxu3 %vm426_vm4, %v352_v15  ;;  %v768_v15 = vld [vmem:[%s1033_s8] sm:$0xff] }
 0x23e   :  { %v343_v24 = vpop.f32.mrf.mxu2 }
 0x23f   :  { %v368_v27 = vmul.f32 %v343_v24, %v939_v28 }
 0x241   :  { %v380_v31 = vpack.c.bf16 %v368_v27, %v368_v27 }
 0x243   :  { %v396_v35 = vunpack.c.l.b16 %v380_v31 }
 0x246   :  { %v345_v29 = vpop.f32.mrf.mxu2 }
 0x247   :  { %v369_v32 = vmul.f32 %v345_v29, %v944_v34 }
 0x249   :  { %v381_v20 = vpack.c.bf16 %v369_v32, %v369_v32 }
 0x24b   :  { %v397_v36 = vunpack.c.l.b16 %v381_v20 }
 0x24d   :  { %v400_v37 = vpack.c.b16 %v397_v36, %v396_v35 }
 0x24e   :  { %v363_v38 = vpop.f32.mrf.mxu3 }
 0x24f   :  { %718 = vmatmul.msk.bf16.vlgmr.msrb.gmra.mxu2 %vm426_vm4, %v400_v37  ;;  %v370_v39 = vmul.f32 %v363_v38, %v942_v30 }
 0x251   :  { %v382_v41 = vpack.c.bf16 %v370_v39, %v370_v39  ;;  %v790_v39 = vld [vmem:[%s1035_s10] ss:$0 sm:$0xff]  ;;  %s827_s10 = smov [#allocation2]  }
 0x252   :  { %s678_s3 = sshll.u32 %s827_s10, 4  ;;  %s679_s3 = int_to_ptr.vmem [resolvable:$true] %s678_s3 }
 0x253   :  { %v398_v44 = vunpack.c.l.b16 %v382_v41 }
 0x256   :  { %v365_v40 = vpop.f32.mrf.mxu3 }
 0x257   :  { %v371_v42 = vmul.f32 %v365_v40, %v947_v33 }
 0x259   :  { %v383_v43 = vpack.c.bf16 %v371_v42, %v371_v42 }
 0x25b   :  { %v399_v45 = vunpack.c.l.b16 %v383_v43 }
 0x25d   :  { %v401_v46 = vpack.c.b16 %v399_v45, %v398_v44 }
 0x25e   :  { %v491_v47 = vpop.f32.mrf.mxu3 }
 0x25f   :  { %719 = vmatmul.msk.bf16.gmra.mxu2 %vm426_vm4, %v401_v46 }
 0x266   :  { %v493_v51 = vpop.f32.mrf.mxu3 }
 0x26e   :  { %v496_v59 = vpop.f32.mrf.mxu3 }
 0x276   :  { %v498_v3 = vpop.f32.mrf.mxu3 }
 0x2d2   :  { %v442_v48 = vpop.f32.mrf.mxu2 }
 0x2d3   :  { %v492_v49 = vadd.f32 %v491_v47, %v442_v48 }
 0x2d5   :  { %v505_v52 = vadd.f32 %v789_v50, %v492_v49 }
 0x2d7   :  { %v509_v54 = vmax.f32 %v505_v52, 0.0 }
 0x2d9   :  { %v513_v57 = vpack.c.bf16 %v509_v54, %v509_v54 }
 0x2da   :  { %v444_v53 = vpop.f32.mrf.mxu2 }
 0x2db   :  { %v494_v55 = vadd.f32 %v493_v51, %v444_v53  ;;  %v519_v63 = vunpack.c.l.b16 %v513_v57 }
 0x2dd   :  { %v506_v56 = vadd.f32 %v789_v50, %v494_v55 }
 0x2df   :  { %v510_v58 = vmax.f32 %v506_v56, 0.0 }
 0x2e1   :  { %v514_v60 = vpack.c.bf16 %v510_v58, %v510_v58 }
 0x2e2   :  { %v447_v61 = vpop.f32.mrf.mxu2 }
 0x2e3   :  { %v497_v62 = vadd.f32 %v496_v59, %v447_v61  ;;  %v520_v0 = vunpack.c.l.b16 %v514_v60 }
 0x2e5   :  { %v521_v1 = vpack.c.b16 %v520_v0, %v519_v63  ;;  %v507_v2 = vadd.f32 %v789_v50, %v497_v62 }
 0x2e7   :  { %530 = vmatpush.bf16.msrb.mxu0 %v521_v1  ;;  %v511_v5 = vmax.f32 %v507_v2, 0.0 }
 0x2e9   :  { %v515_v8 = vpack.c.bf16 %v511_v5, %v511_v5 }
 0x2ea   :  { %v449_v4 = vpop.f32.mrf.mxu2  ;;  %738 = vmatmul.msk.bf16.vlgmr.msrb.gmra.mxu0 %vm62_vm0, %v902_v25  ;;  %v771_v25 = vld [vmem:[%s1034_s9 + $0x8] sm:$0xff] }
 0x2eb   :  { %v499_v6 = vadd.f32 %v498_v3, %v449_v4  ;;  %v539_v11 = vunpack.c.l.b16 %v515_v8  ;;  %608 = vmatpush.bf16.msra.mxu0 %v771_v25 }
 0x2ed   :  { %v508_v7 = vadd.f32 %v789_v50, %v499_v6 }
 0x2ef   :  { %v512_v9 = vmax.f32 %v508_v7, 0.0  ;;  %609 = vmatpush.bf16.msra.mxu0 %v770_v16 }
 0x2f1   :  { %v516_v10 = vpack.c.bf16 %v512_v9, %v512_v9 }
 0x2f3   :  { %v540_v12 = vunpack.c.l.b16 %v516_v10 }
 0x2f5   :  { %v541_v14 = vpack.c.b16 %v540_v12, %v539_v11 }
 0x2f7   :  { %550 = vmatpush.bf16.msrb.mxu1 %v541_v14 }
 0x2fa   :  { %739 = vmatmul.msk.bf16.vlgmr.msrb.gmra.mxu1 %vm62_vm0, %v904_v26 }
 0x2fb   :  { %645 = vmatpush.bf16.msra.mxu1 %v769_v13 }
 0x2ff   :  { %646 = vmatpush.bf16.msra.mxu1 %v768_v15 }
 0x30a   :  { %758 = vmatmul.msk.bf16.vlgmr.msra.gmra.mxu1 %vm595_vm5, %v521_v1 }
 0x31a   :  { %759 = vmatmul.msk.bf16.gmra.mxu1 %vm595_vm5, %v541_v14 }
 0x367   :  { %v532_v17 = vpop.f32.mrf.mxu0 }
 0x368   :  { %v557_v18 = vmul.f32 %v532_v17, %v939_v28 }
 0x36a   :  { %v565_v19 = vpack.c.bf16 %v557_v18, %v557_v18 }
 0x36c   :  { %v577_v23 = vunpack.c.l.b16 %v565_v19 }
 0x36f   :  { %v534_v26 = vpop.f32.mrf.mxu0 }
 0x370   :  { %v558_v21 = vmul.f32 %v534_v26, %v944_v34 }
 0x372   :  { %v566_v22 = vpack.c.bf16 %v558_v21, %v558_v21 }
 0x374   :  { %v578_v24 = vunpack.c.l.b16 %v566_v22 }
 0x376   :  { %v581_v27 = vpack.c.b16 %v578_v24, %v577_v23 }
 0x377   :  { %v552_v29 = vpop.f32.mrf.mxu1 }
 0x378   :  { %748 = vmatmul.msk.bf16.vlgmr.msra.gmra.mxu0 %vm595_vm5, %v581_v27  ;;  %v559_v31 = vmul.f32 %v552_v29, %v942_v30 }
 0x37a   :  { %v567_v20 = vpack.c.bf16 %v559_v31, %v559_v31 }
 0x37c   :  { %v579_v37 = vunpack.c.l.b16 %v567_v20 }
 0x37f   :  { %v554_v32 = vpop.f32.mrf.mxu1 }
 0x380   :  { %v560_v35 = vmul.f32 %v554_v32, %v947_v33 }
 0x382   :  { %v568_v36 = vpack.c.bf16 %v560_v35, %v560_v35 }
 0x384   :  { %v580_v28 = vunpack.c.l.b16 %v568_v36 }
 0x386   :  { %v582_v38 = vpack.c.b16 %v580_v28, %v579_v37 }
 0x387   :  { %v648_v34 = vpop.f32.mrf.mxu1 }
 0x388   :  { %749 = vmatmul.msk.bf16.gmra.mxu0 %vm595_vm5, %v582_v38 }
 0x38f   :  { %v650_v43 = vpop.f32.mrf.mxu1 }
 0x397   :  { %v653_v47 = vpop.f32.mrf.mxu1 }
 0x39f   :  { %v655_v52 = vpop.f32.mrf.mxu1 }
 0x3f5   :  { %v611_v40 = vpop.f32.mrf.mxu0 }
 0x3f6   :  { %v649_v41 = vadd.f32 %v648_v34, %v611_v40 }
 0x3f8   :  { %v662_v42 = vadd.f32 %v790_v39, %v649_v41 }
 0x3fa   :  { %v666_v30 = vmax.f32 %v662_v42, 0.0 }
 0x3fc   :  { %670 = vst [vmem:[#allocation2] sm:$0xff] %v666_v30 }
 0x3fd   :  { %v613_v44 = vpop.f32.mrf.mxu0 }
 0x3fe   :  { %v651_v45 = vadd.f32 %v650_v43, %v613_v44 }
 0x400   :  { %v663_v33 = vadd.f32 %v790_v39, %v651_v45 }
 0x402   :  { %v667_v46 = vmax.f32 %v663_v33, 0.0 }
 0x404   :  { %671 = vst [vmem:[#allocation2 + $0x8] sm:$0xff] %v667_v46 }
 0x405   :  { %v616_v48 = vpop.f32.mrf.mxu0 }
 0x406   :  { %v654_v49 = vadd.f32 %v653_v47, %v616_v48 }
 0x408   :  { %v664_v50 = vadd.f32 %v790_v39, %v654_v49 }
 0x40a   :  { %v668_v51 = vmax.f32 %v664_v50, 0.0 }
 0x40c   :  { %672 = vst [vmem:[#allocation2 + $0x10] sm:$0xff] %v668_v51 }
 0x40d   :  { %v618_v53 = vpop.f32.mrf.mxu0 }
 0x40e   :  { %v656_v54 = vadd.f32 %v655_v52, %v618_v53 }
 0x410   :  { %v665_v55 = vadd.f32 %v790_v39, %v656_v54 }
 0x412   :  { %v669_v56 = vmax.f32 %v665_v55, 0.0 }
 0x414   :  { %673 = vst [vmem:[#allocation2 + $0x18] sm:$0xff] %v669_v56 }
 0x415   :  { %686 = dma.vmem_to_hbm [thread:$0]  %s679_s3, 512, %s681_s30, [#allocation3], %s828_s12, %s828_s12, %s829_s13  }
 0x416   :  { %823 = dma.done.wait [#allocation3], 512  }
 0x417   :  { %824 = vsyncadd [#allocation3], 4294966784 }
 0x418   :  { %691 = vsyncpa [#allocation3], 1 }

</bundles_post_ra>
